<compile_context>
chip_gen: v5e
topology: v5e:2x2
jax: 0.10.0
libtpu: 0.0.40
codegen_flags: <defaults>
</compile_context>

<pallas_src>
import functools

import jax
import jax.numpy as jnp
from jax.experimental import pallas as pl
from jax.experimental.pallas import tpu as pltpu

# Set to jnp.bfloat16 on v6e/v7x for ~2x+ MXU throughput and half the weight
# DMA (loosen the verification tolerance accordingly). f32 keeps the exact
# check against the f32 reference below.
MXU_DTYPE = jnp.float32


# ----------------------------------------------------------------------------
# Fused kernel: patch-embedding projection + GRU over time + MLP head.
# ROI pooling (a pure linear reduction over P) happens in the wrapper.
# ----------------------------------------------------------------------------
def pipeline_kernel(pooled_ref, wp_ref, bp_ref,
                    wih_ref, bih_ref, whh_ref, bhh_ref,
                    w1_ref, b1_ref, w2_ref, b2_ref, out_ref):
    # pooled_ref: (T, BB, Cp)   pooled per-frame features for this batch chunk
    # wih_ref   : (D, 3*Hg)     fused input->gates weights  (r|z|n)
    # whh_ref   : (Hg, 3*Hg)    fused hidden->gates weights (r|z|n)
    # out_ref   : (BB, C_pad)   lane-dense (padded to 128) logits
    T, BB, Cp = pooled_ref.shape
    Hg = whh_ref.shape[0]
    H3 = whh_ref.shape[1]

    def mdot(a, b):
        return jnp.dot(a.astype(MXU_DTYPE), b.astype(MXU_DTYPE),
                       preferred_element_type=jnp.float32)

    # Layout-preserving collapse (sublane dim is exactly 8): (T,BB,Cp)->(T*BB,Cp)
    pooled = pooled_ref[...].reshape(T * BB, Cp)

    # --- patch-embedding projection: one MXU matmul for all frames ---
    seq = mdot(pooled, wp_ref[...]) + bp_ref[...]                  # (T*BB, D)

    # --- all input-side gate projections in ONE matmul (off the recurrence) ---
    gi_all = mdot(seq, wih_ref[...]) + bih_ref[...]                # (T*BB, 3Hg)

    whh = whh_ref[...]
    bhh = jnp.broadcast_to(bhh_ref[...], (BB, H3))                 # hoisted

    # --- GRU recurrence: 1 fused (BB,Hg)@(Hg,3Hg) dot per step ---
    h = jnp.zeros((BB, Hg), jnp.float32)
    for t in range(T):                           # T is small & static
        gi = gi_all[t * BB:(t + 1) * BB, :]      # aligned 8-row slab
        gh = mdot(h, whh) + bhh                  # (BB, 3Hg)
        r = jax.nn.sigmoid(gi[:, 0:Hg] + gh[:, 0:Hg])
        z = jax.nn.sigmoid(gi[:, Hg:2 * Hg] + gh[:, Hg:2 * Hg])
        n = jnp.tanh(gi[:, 2 * Hg:3 * Hg] + r * gh[:, 2 * Hg:3 * Hg])
        h = (1.0 - z) * n + z * h                # PyTorch GRU update

    # --- MLP head (output padded to 128 lanes -> unmasked dense store) ---
    hid = jnp.maximum(mdot(h, w1_ref[...]) + b1_ref[...], 0.0)
    out_ref[...] = mdot(hid, w2_ref[...]) + b2_ref[...]


def run_pipeline_kernel(pooled_tm, params, w2p, b2p, b_pad, bb, c_pad):
    T, _, Cp = pooled_tm.shape

    def vmem_full():
        return pl.BlockSpec(memory_space=pltpu.MemorySpace.VMEM)

    return pl.pallas_call(
        pipeline_kernel,
        out_shape=jax.ShapeDtypeStruct((b_pad, c_pad), jnp.float32),
        grid=(b_pad // bb,),
        in_specs=[
            # pooled features: streamed per batch chunk (parallel grid axis)
            pl.BlockSpec((T, bb, Cp), lambda i: (0, i, 0)),
            vmem_full(), vmem_full(),   # w_patch, b_patch
            vmem_full(), vmem_full(),   # wih (fused), b_ih (fused)
            vmem_full(), vmem_full(),   # whh (fused), b_hh (fused)
            vmem_full(), vmem_full(),   # w1, b1
            vmem_full(), vmem_full(),   # w2 (lane-padded), b2 (lane-padded)
        ],
        out_specs=pl.BlockSpec((bb, c_pad), lambda i: (i, 0)),
        compiler_params=pltpu.CompilerParams(
            dimension_semantics=("parallel",),        # megacore on v7x
            vmem_limit_bytes=32 * 1024 * 1024),       # explicit (v5e default 16MiB)
    )(pooled_tm,
      params["w_patch"], params["b_patch"],
      params["wih"], params["b_ih"],
      params["whh"], params["b_hh"],
      params["w1"], params["b1"],
      w2p, b2p)


# ----------------------------------------------------------------------------
# JAX glue: patchify + ROI overlap masks + ROI pooling + layout prep
# ----------------------------------------------------------------------------
def patchify(frames, ps):
    B, T, C, H, W = frames.shape
    hn, wn = H // ps, W // ps
    x = frames.reshape(B, T, C, hn, ps, wn, ps)
    x = x.transpose(0, 1, 3, 5, 2, 4, 6)              # (B,T,hn,wn,C,ps,ps)
    return x.reshape(B, T, hn * wn, C * ps * ps)      # (B,T,P,Cp)


def roi_masks(bboxes, H, W, ps):
    # bboxes: (B, T, N, 4) pixel coords (x1, y1, x2, y2)
    B, T, N, _ = bboxes.shape
    hn, wn = H // ps, W // ps
    P = hn * wn
    px0 = jnp.tile(jnp.arange(wn, dtype=jnp.float32) * ps, hn)      # (P,)
    py0 = jnp.repeat(jnp.arange(hn, dtype=jnp.float32) * ps, wn)    # (P,)
    px1, py1 = px0 + ps, py0 + ps
    x1 = bboxes[..., 0:1]
    y1 = bboxes[..., 1:2]
    x2 = bboxes[..., 2:3]
    y2 = bboxes[..., 3:4]
    ox = jnp.clip(jnp.minimum(x2, px1) - jnp.maximum(x1, px0), 0.0)
    oy = jnp.clip(jnp.minimum(y2, py1) - jnp.maximum(y1, py0), 0.0)
    frac = ox * oy                                                   # (B,T,N,P)
    roi_w = frac / (jnp.sum(frac, axis=-1, keepdims=True) + 1e-6)
    cls_w = jnp.full((B, T, 1, P), 1.0 / P, dtype=jnp.float32)
    return jnp.concatenate([cls_w, roi_w], axis=2)                   # (B,T,N+1,P)


@functools.partial(jax.jit, static_argnames=("ps",))
def full_gru_pipeline(frames, bboxes, params, ps):
    B, T, _, H, W = frames.shape
    patches = patchify(frames, ps)                     # (B,T,P,Cp)
    masks = roi_masks(bboxes, H, W, ps)                # (B,T,N+1,P)

    # Node-mean over the (N+1) ROI tokens is linear -> fold into the masks,
    # then reduce over P here so the kernel only ever sees the pooled result.
    w_frame = masks.mean(axis=2)                       # (B,T,P)
    pooled = jnp.einsum("btp,btpc->btc", w_frame, patches,
                        precision=jax.lax.Precision.HIGHEST)         # (B,T,Cp)

    # Pad batch to a multiple of 8 sublanes; time-major layout so each GRU
    # step inside the kernel reads an aligned (8, .) slab.
    BB = 8
    B_pad = ((B + BB - 1) // BB) * BB
    pooled = jnp.pad(pooled, ((0, B_pad - B), (0, 0), (0, 0)))
    pooled_tm = pooled.transpose(1, 0, 2)              # (T, B_pad, Cp)

    # Lane-dense output: pad the classifier head to 128 lanes, slice after.
    C = params["w2"].shape[1]
    C_pad = 128
    w2p = jnp.pad(params["w2"], ((0, 0), (0, C_pad - C)))
    b2p = jnp.pad(params["b2"], ((0, 0), (0, C_pad - C)))

    logits_pad = run_pipeline_kernel(pooled_tm, params, w2p, b2p,
                                     B_pad, BB, C_pad)
    return logits_pad[:B, :C]


# ----------------------------------------------------------------------------
# Pure-JAX reference (unfolded math) for verification
# ----------------------------------------------------------------------------
def reference(frames, bboxes, params, ps):
    hp = jax.lax.Precision.HIGHEST
    B, T, _, H, W = frames.shape
    patches = patchify(frames, ps)                                   # (B,T,P,Cp)
    masks = roi_masks(bboxes, H, W, ps)                              # (B,T,N+1,P)

    tokens = jnp.einsum("btpc,cd->btpd", patches, params["w_patch"],
                        precision=hp) + params["b_patch"]            # (B,T,P,D)
    roi_cls = jnp.einsum("btnp,btpd->btnd", masks, tokens, precision=hp)
    seq = roi_cls.mean(axis=2)                                       # (B,T,D)

    wih, whh = params["wih"], params["whh"]
    b_ih, b_hh = params["b_ih"], params["b_hh"]
    Hg = whh.shape[0]

    def step(h, x_t):
        gi = jnp.dot(x_t, wih, precision=hp) + b_ih
        gh = jnp.dot(h, whh, precision=hp) + b_hh
        r = jax.nn.sigmoid(gi[:, 0:Hg] + gh[:, 0:Hg])
        z = jax.nn.sigmoid(gi[:, Hg:2 * Hg] + gh[:, Hg:2 * Hg])
        n = jnp.tanh(gi[:, 2 * Hg:] + r * gh[:, 2 * Hg:])
        return (1.0 - z) * n + z * h, None

    h0 = jnp.zeros((B, Hg), jnp.float32)
    h_last, _ = jax.lax.scan(step, h0, seq.transpose(1, 0, 2))
    hid = jnp.maximum(jnp.dot(h_last, params["w1"], precision=hp) + params["b1"], 0.0)
    return jnp.dot(hid, params["w2"], precision=hp) + params["b2"]


# ----------------------------------------------------------------------------
def init_params(key, patch_dim, hidden_dim, gru_hidden, mlp_hidden, num_classes):
    ks = jax.random.split(key, 10)
    s = 0.05
    return {
        "w_patch": s * jax.random.normal(ks[0], (patch_dim, hidden_dim), jnp.float32),
        "b_patch": s * jax.random.normal(ks[1], (1, hidden_dim), jnp.float32),
        # GRU gate weights fused on the lane axis in PyTorch nn.GRU order
        # (reset | update | new) so the kernel does ONE dot per operand.
        "wih":  s * jax.random.normal(ks[2], (hidden_dim, 3 * gru_hidden), jnp.float32),
        "whh":  s * jax.random.normal(ks[3], (gru_hidden, 3 * gru_hidden), jnp.float32),
        "b_ih": s * jax.random.normal(ks[4], (1, 3 * gru_hidden), jnp.float32),
        "b_hh": s * jax.random.normal(ks[5], (1, 3 * gru_hidden), jnp.float32),
        "w1":   s * jax.random.normal(ks[6], (gru_hidden, mlp_hidden), jnp.float32),
        "b1":   s * jax.random.normal(ks[7], (1, mlp_hidden), jnp.float32),
        "w2":   s * jax.random.normal(ks[8], (mlp_hidden, num_classes), jnp.float32),
        "b2":   s * jax.random.normal(ks[9], (1, num_classes), jnp.float32),
    }


if __name__ == "__main__":
    # Small shapes consistent with the module's forward:
    B, T, N = 2, 4, 3
    H = W = 32
    ps = 8                      # patch_size
    hidden_dim = 64             # ViT hidden dim (scaled down from 768)
    gru_hidden = 32             # scaled down from 256
    mlp_hidden = 32
    num_classes = 2
    patch_dim = 3 * ps * ps

    key = jax.random.PRNGKey(0)
    k_f, k_b1, k_b2, k_p = jax.random.split(key, 4)

    frames = jax.random.normal(k_f, (B, T, 3, H, W), jnp.float32)
    x1 = jax.random.uniform(k_b1, (B, T, N, 1), minval=0.0, maxval=W * 0.5)
    y1 = jax.random.uniform(k_b2, (B, T, N, 1), minval=0.0, maxval=H * 0.5)
    x2 = jnp.clip(x1 + ps + jax.random.uniform(k_b1, (B, T, N, 1)) * (W * 0.4), 0, W)
    y2 = jnp.clip(y1 + ps + jax.random.uniform(k_b2, (B, T, N, 1)) * (H * 0.4), 0, H)
    bboxes = jnp.concatenate([x1, y1, x2, y2], axis=-1)               # (B,T,N,4)

    params = init_params(k_p, patch_dim, hidden_dim, gru_hidden,
                         mlp_hidden, num_classes)

    logits = full_gru_pipeline(frames, bboxes, params, ps)
    logits = jax.block_until_ready(logits)

    ref = reference(frames, bboxes, params, ps)
    assert logits.shape == (B, num_classes)
    assert jnp.allclose(logits, ref, atol=5e-4, rtol=5e-4), (logits, ref)

    print("KERNEL_OK")
</pallas_src>

<mosaic_0001>
module attributes {stable_mosaic.version = 11 : i64} {
  func.func @pipeline_kernel(%arg0: i32, %arg1: memref<4x8x192xf32, #tpu.memory_space<vmem>>, %arg2: memref<192x64xf32, #tpu.memory_space<vmem>>, %arg3: memref<1x64xf32, #tpu.memory_space<vmem>>, %arg4: memref<64x96xf32, #tpu.memory_space<vmem>>, %arg5: memref<1x96xf32, #tpu.memory_space<vmem>>, %arg6: memref<32x96xf32, #tpu.memory_space<vmem>>, %arg7: memref<1x96xf32, #tpu.memory_space<vmem>>, %arg8: memref<32x32xf32, #tpu.memory_space<vmem>>, %arg9: memref<1x32xf32, #tpu.memory_space<vmem>>, %arg10: memref<32x128xf32, #tpu.memory_space<vmem>>, %arg11: memref<1x128xf32, #tpu.memory_space<vmem>>, %arg12: memref<8x128xf32, #tpu.memory_space<vmem>>) attributes {dimension_semantics = [#tpu.dimension_semantics<parallel>], iteration_bounds = array<i64: 1>, scalar_prefetch = 0 : i64, scratch_operands = 0 : i64, tpu.core_type = #tpu.core_type<tc>, window_params = [{transform_indices = @transform_0, window_bounds = array<i64: 4, 8, 192>}, {pipeline_mode = #tpu.pipeline_mode<synchronous>, transform_indices = @transform_1, window_bounds = array<i64: 192, 64>}, {pipeline_mode = #tpu.pipeline_mode<synchronous>, transform_indices = @transform_2, window_bounds = array<i64: 1, 64>}, {pipeline_mode = #tpu.pipeline_mode<synchronous>, transform_indices = @transform_3, window_bounds = array<i64: 64, 96>}, {pipeline_mode = #tpu.pipeline_mode<synchronous>, transform_indices = @transform_4, window_bounds = array<i64: 1, 96>}, {pipeline_mode = #tpu.pipeline_mode<synchronous>, transform_indices = @transform_5, window_bounds = array<i64: 32, 96>}, {pipeline_mode = #tpu.pipeline_mode<synchronous>, transform_indices = @transform_6, window_bounds = array<i64: 1, 96>}, {pipeline_mode = #tpu.pipeline_mode<synchronous>, transform_indices = @transform_7, window_bounds = array<i64: 32, 32>}, {pipeline_mode = #tpu.pipeline_mode<synchronous>, transform_indices = @transform_8, window_bounds = array<i64: 1, 32>}, {pipeline_mode = #tpu.pipeline_mode<synchronous>, transform_indices = @transform_9, window_bounds = array<i64: 32, 128>}, {pipeline_mode = #tpu.pipeline_mode<synchronous>, transform_indices = @transform_10, window_bounds = array<i64: 1, 128>}, {transform_indices = @transform_11, window_bounds = array<i64: 8, 128>}]} {
    %c0 = arith.constant 0 : index
    %c0_0 = arith.constant 0 : index
    %c0_1 = arith.constant 0 : index
    %0 = vector.load %arg1[%c0, %c0_0, %c0_1] : memref<4x8x192xf32, #tpu.memory_space<vmem>>, vector<4x8x192xf32>
    %1 = vector.shape_cast %0 : vector<4x8x192xf32> to vector<32x192xf32>
    %c0_2 = arith.constant 0 : index
    %c0_3 = arith.constant 0 : index
    %2 = vector.load %arg2[%c0_2, %c0_3] : memref<192x64xf32, #tpu.memory_space<vmem>>, vector<192x64xf32>
    %cst = arith.constant dense<0.000000e+00> : vector<32x64xf32>
    %3 = tpu.matmul %1, %2, %cst {dimension_numbers = #tpu.dot_dimension_numbers<[1], [0], [0], [1], [0, 0, 1, 1], [], []>} : vector<32x192xf32>, vector<192x64xf32>, vector<32x64xf32> -> vector<32x64xf32>
    %c0_4 = arith.constant 0 : index
    %c0_5 = arith.constant 0 : index
    %4 = vector.load %arg3[%c0_4, %c0_5] : memref<1x64xf32, #tpu.memory_space<vmem>>, vector<1x64xf32>
    %5 = vector.broadcast %4 : vector<1x64xf32> to vector<32x64xf32>
    %6 = arith.addf %3, %5 : vector<32x64xf32>
    %c0_6 = arith.constant 0 : index
    %c0_7 = arith.constant 0 : index
    %7 = vector.load %arg4[%c0_6, %c0_7] : memref<64x96xf32, #tpu.memory_space<vmem>>, vector<64x96xf32>
    %cst_8 = arith.constant dense<0.000000e+00> : vector<32x96xf32>
    %8 = tpu.matmul %6, %7, %cst_8 {dimension_numbers = #tpu.dot_dimension_numbers<[1], [0], [0], [1], [0, 0, 1, 1], [], []>} : vector<32x64xf32>, vector<64x96xf32>, vector<32x96xf32> -> vector<32x96xf32>
    %c0_9 = arith.constant 0 : index
    %c0_10 = arith.constant 0 : index
    %9 = vector.load %arg5[%c0_9, %c0_10] : memref<1x96xf32, #tpu.memory_space<vmem>>, vector<1x96xf32>
    %10 = vector.broadcast %9 : vector<1x96xf32> to vector<32x96xf32>
    %11 = arith.addf %8, %10 : vector<32x96xf32>
    %c0_11 = arith.constant 0 : index
    %c0_12 = arith.constant 0 : index
    %12 = vector.load %arg6[%c0_11, %c0_12] : memref<32x96xf32, #tpu.memory_space<vmem>>, vector<32x96xf32>
    %c0_13 = arith.constant 0 : index
    %c0_14 = arith.constant 0 : index
    %13 = vector.load %arg7[%c0_13, %c0_14] : memref<1x96xf32, #tpu.memory_space<vmem>>, vector<1x96xf32>
    %14 = vector.shape_cast %13 : vector<1x96xf32> to vector<1x96xf32>
    %15 = vector.broadcast %14 : vector<1x96xf32> to vector<8x96xf32>
    %cst_15 = arith.constant 0.000000e+00 : f32
    %16 = vector.broadcast %cst_15 : f32 to vector<8x32xf32>
    %17 = vector.extract_strided_slice %11 {offsets = [0, 0], sizes = [8, 96], strides = [1, 1]} : vector<32x96xf32> to vector<8x96xf32>
    %cst_16 = arith.constant dense<0.000000e+00> : vector<8x96xf32>
    %18 = tpu.matmul %16, %12, %cst_16 {dimension_numbers = #tpu.dot_dimension_numbers<[1], [0], [0], [1], [0, 0, 1, 1], [], []>} : vector<8x32xf32>, vector<32x96xf32>, vector<8x96xf32> -> vector<8x96xf32>
    %19 = arith.addf %18, %15 : vector<8x96xf32>
    %20 = vector.extract_strided_slice %17 {offsets = [0, 0], sizes = [8, 32], strides = [1, 1]} : vector<8x96xf32> to vector<8x32xf32>
    %21 = vector.extract_strided_slice %19 {offsets = [0, 0], sizes = [8, 32], strides = [1, 1]} : vector<8x96xf32> to vector<8x32xf32>
    %22 = arith.addf %20, %21 : vector<8x32xf32>
    %23 = arith.negf %22 : vector<8x32xf32>
    %24 = math.exp %23 : vector<8x32xf32>
    %cst_17 = arith.constant 1.000000e+00 : f32
    %25 = vector.broadcast %cst_17 : f32 to vector<8x32xf32>
    %26 = arith.addf %25, %24 : vector<8x32xf32>
    %27 = arith.divf %25, %26 : vector<8x32xf32>
    %28 = vector.extract_strided_slice %17 {offsets = [0, 32], sizes = [8, 32], strides = [1, 1]} : vector<8x96xf32> to vector<8x32xf32>
    %29 = vector.extract_strided_slice %19 {offsets = [0, 32], sizes = [8, 32], strides = [1, 1]} : vector<8x96xf32> to vector<8x32xf32>
    %30 = arith.addf %28, %29 : vector<8x32xf32>
    %31 = arith.negf %30 : vector<8x32xf32>
    %32 = math.exp %31 : vector<8x32xf32>
    %cst_18 = arith.constant 1.000000e+00 : f32
    %33 = vector.broadcast %cst_18 : f32 to vector<8x32xf32>
    %34 = arith.addf %33, %32 : vector<8x32xf32>
    %35 = arith.divf %33, %34 : vector<8x32xf32>
    %36 = vector.extract_strided_slice %17 {offsets = [0, 64], sizes = [8, 32], strides = [1, 1]} : vector<8x96xf32> to vector<8x32xf32>
    %37 = vector.extract_strided_slice %19 {offsets = [0, 64], sizes = [8, 32], strides = [1, 1]} : vector<8x96xf32> to vector<8x32xf32>
    %38 = arith.mulf %27, %37 : vector<8x32xf32>
    %39 = arith.addf %36, %38 : vector<8x32xf32>
    %40 = math.tanh %39 : vector<8x32xf32>
    %cst_19 = arith.constant 1.000000e+00 : f32
    %41 = vector.broadcast %cst_19 : f32 to vector<8x32xf32>
    %42 = arith.subf %41, %35 : vector<8x32xf32>
    %43 = arith.mulf %42, %40 : vector<8x32xf32>
    %44 = arith.mulf %35, %16 : vector<8x32xf32>
    %45 = arith.addf %43, %44 : vector<8x32xf32>
    %46 = vector.extract_strided_slice %11 {offsets = [8, 0], sizes = [8, 96], strides = [1, 1]} : vector<32x96xf32> to vector<8x96xf32>
    %cst_20 = arith.constant dense<0.000000e+00> : vector<8x96xf32>
    %47 = tpu.matmul %45, %12, %cst_20 {dimension_numbers = #tpu.dot_dimension_numbers<[1], [0], [0], [1], [0, 0, 1, 1], [], []>} : vector<8x32xf32>, vector<32x96xf32>, vector<8x96xf32> -> vector<8x96xf32>
    %48 = arith.addf %47, %15 : vector<8x96xf32>
    %49 = vector.extract_strided_slice %46 {offsets = [0, 0], sizes = [8, 32], strides = [1, 1]} : vector<8x96xf32> to vector<8x32xf32>
    %50 = vector.extract_strided_slice %48 {offsets = [0, 0], sizes = [8, 32], strides = [1, 1]} : vector<8x96xf32> to vector<8x32xf32>
    %51 = arith.addf %49, %50 : vector<8x32xf32>
    %52 = arith.negf %51 : vector<8x32xf32>
    %53 = math.exp %52 : vector<8x32xf32>
    %cst_21 = arith.constant 1.000000e+00 : f32
    %54 = vector.broadcast %cst_21 : f32 to vector<8x32xf32>
    %55 = arith.addf %54, %53 : vector<8x32xf32>
    %56 = arith.divf %54, %55 : vector<8x32xf32>
    %57 = vector.extract_strided_slice %46 {offsets = [0, 32], sizes = [8, 32], strides = [1, 1]} : vector<8x96xf32> to vector<8x32xf32>
    %58 = vector.extract_strided_slice %48 {offsets = [0, 32], sizes = [8, 32], strides = [1, 1]} : vector<8x96xf32> to vector<8x32xf32>
    %59 = arith.addf %57, %58 : vector<8x32xf32>
    %60 = arith.negf %59 : vector<8x32xf32>
    %61 = math.exp %60 : vector<8x32xf32>
    %cst_22 = arith.constant 1.000000e+00 : f32
    %62 = vector.broadcast %cst_22 : f32 to vector<8x32xf32>
    %63 = arith.addf %62, %61 : vector<8x32xf32>
    %64 = arith.divf %62, %63 : vector<8x32xf32>
    %65 = vector.extract_strided_slice %46 {offsets = [0, 64], sizes = [8, 32], strides = [1, 1]} : vector<8x96xf32> to vector<8x32xf32>
    %66 = vector.extract_strided_slice %48 {offsets = [0, 64], sizes = [8, 32], strides = [1, 1]} : vector<8x96xf32> to vector<8x32xf32>
    %67 = arith.mulf %56, %66 : vector<8x32xf32>
    %68 = arith.addf %65, %67 : vector<8x32xf32>
    %69 = math.tanh %68 : vector<8x32xf32>
    %cst_23 = arith.constant 1.000000e+00 : f32
    %70 = vector.broadcast %cst_23 : f32 to vector<8x32xf32>
    %71 = arith.subf %70, %64 : vector<8x32xf32>
    %72 = arith.mulf %71, %69 : vector<8x32xf32>
    %73 = arith.mulf %64, %45 : vector<8x32xf32>
    %74 = arith.addf %72, %73 : vector<8x32xf32>
    %75 = vector.extract_strided_slice %11 {offsets = [16, 0], sizes = [8, 96], strides = [1, 1]} : vector<32x96xf32> to vector<8x96xf32>
    %cst_24 = arith.constant dense<0.000000e+00> : vector<8x96xf32>
    %76 = tpu.matmul %74, %12, %cst_24 {dimension_numbers = #tpu.dot_dimension_numbers<[1], [0], [0], [1], [0, 0, 1, 1], [], []>} : vector<8x32xf32>, vector<32x96xf32>, vector<8x96xf32> -> vector<8x96xf32>
    %77 = arith.addf %76, %15 : vector<8x96xf32>
    %78 = vector.extract_strided_slice %75 {offsets = [0, 0], sizes = [8, 32], strides = [1, 1]} : vector<8x96xf32> to vector<8x32xf32>
    %79 = vector.extract_strided_slice %77 {offsets = [0, 0], sizes = [8, 32], strides = [1, 1]} : vector<8x96xf32> to vector<8x32xf32>
    %80 = arith.addf %78, %79 : vector<8x32xf32>
    %81 = arith.negf %80 : vector<8x32xf32>
    %82 = math.exp %81 : vector<8x32xf32>
    %cst_25 = arith.constant 1.000000e+00 : f32
    %83 = vector.broadcast %cst_25 : f32 to vector<8x32xf32>
    %84 = arith.addf %83, %82 : vector<8x32xf32>
    %85 = arith.divf %83, %84 : vector<8x32xf32>
    %86 = vector.extract_strided_slice %75 {offsets = [0, 32], sizes = [8, 32], strides = [1, 1]} : vector<8x96xf32> to vector<8x32xf32>
    %87 = vector.extract_strided_slice %77 {offsets = [0, 32], sizes = [8, 32], strides = [1, 1]} : vector<8x96xf32> to vector<8x32xf32>
    %88 = arith.addf %86, %87 : vector<8x32xf32>
    %89 = arith.negf %88 : vector<8x32xf32>
    %90 = math.exp %89 : vector<8x32xf32>
    %cst_26 = arith.constant 1.000000e+00 : f32
    %91 = vector.broadcast %cst_26 : f32 to vector<8x32xf32>
    %92 = arith.addf %91, %90 : vector<8x32xf32>
    %93 = arith.divf %91, %92 : vector<8x32xf32>
    %94 = vector.extract_strided_slice %75 {offsets = [0, 64], sizes = [8, 32], strides = [1, 1]} : vector<8x96xf32> to vector<8x32xf32>
    %95 = vector.extract_strided_slice %77 {offsets = [0, 64], sizes = [8, 32], strides = [1, 1]} : vector<8x96xf32> to vector<8x32xf32>
    %96 = arith.mulf %85, %95 : vector<8x32xf32>
    %97 = arith.addf %94, %96 : vector<8x32xf32>
    %98 = math.tanh %97 : vector<8x32xf32>
    %cst_27 = arith.constant 1.000000e+00 : f32
    %99 = vector.broadcast %cst_27 : f32 to vector<8x32xf32>
    %100 = arith.subf %99, %93 : vector<8x32xf32>
    %101 = arith.mulf %100, %98 : vector<8x32xf32>
    %102 = arith.mulf %93, %74 : vector<8x32xf32>
    %103 = arith.addf %101, %102 : vector<8x32xf32>
    %104 = vector.extract_strided_slice %11 {offsets = [24, 0], sizes = [8, 96], strides = [1, 1]} : vector<32x96xf32> to vector<8x96xf32>
    %cst_28 = arith.constant dense<0.000000e+00> : vector<8x96xf32>
    %105 = tpu.matmul %103, %12, %cst_28 {dimension_numbers = #tpu.dot_dimension_numbers<[1], [0], [0], [1], [0, 0, 1, 1], [], []>} : vector<8x32xf32>, vector<32x96xf32>, vector<8x96xf32> -> vector<8x96xf32>
    %106 = arith.addf %105, %15 : vector<8x96xf32>
    %107 = vector.extract_strided_slice %104 {offsets = [0, 0], sizes = [8, 32], strides = [1, 1]} : vector<8x96xf32> to vector<8x32xf32>
    %108 = vector.extract_strided_slice %106 {offsets = [0, 0], sizes = [8, 32], strides = [1, 1]} : vector<8x96xf32> to vector<8x32xf32>
    %109 = arith.addf %107, %108 : vector<8x32xf32>
    %110 = arith.negf %109 : vector<8x32xf32>
    %111 = math.exp %110 : vector<8x32xf32>
    %cst_29 = arith.constant 1.000000e+00 : f32
    %112 = vector.broadcast %cst_29 : f32 to vector<8x32xf32>
    %113 = arith.addf %112, %111 : vector<8x32xf32>
    %114 = arith.divf %112, %113 : vector<8x32xf32>
    %115 = vector.extract_strided_slice %104 {offsets = [0, 32], sizes = [8, 32], strides = [1, 1]} : vector<8x96xf32> to vector<8x32xf32>
    %116 = vector.extract_strided_slice %106 {offsets = [0, 32], sizes = [8, 32], strides = [1, 1]} : vector<8x96xf32> to vector<8x32xf32>
    %117 = arith.addf %115, %116 : vector<8x32xf32>
    %118 = arith.negf %117 : vector<8x32xf32>
    %119 = math.exp %118 : vector<8x32xf32>
    %cst_30 = arith.constant 1.000000e+00 : f32
    %120 = vector.broadcast %cst_30 : f32 to vector<8x32xf32>
    %121 = arith.addf %120, %119 : vector<8x32xf32>
    %122 = arith.divf %120, %121 : vector<8x32xf32>
    %123 = vector.extract_strided_slice %104 {offsets = [0, 64], sizes = [8, 32], strides = [1, 1]} : vector<8x96xf32> to vector<8x32xf32>
    %124 = vector.extract_strided_slice %106 {offsets = [0, 64], sizes = [8, 32], strides = [1, 1]} : vector<8x96xf32> to vector<8x32xf32>
    %125 = arith.mulf %114, %124 : vector<8x32xf32>
    %126 = arith.addf %123, %125 : vector<8x32xf32>
    %127 = math.tanh %126 : vector<8x32xf32>
    %cst_31 = arith.constant 1.000000e+00 : f32
    %128 = vector.broadcast %cst_31 : f32 to vector<8x32xf32>
    %129 = arith.subf %128, %122 : vector<8x32xf32>
    %130 = arith.mulf %129, %127 : vector<8x32xf32>
    %131 = arith.mulf %122, %103 : vector<8x32xf32>
    %132 = arith.addf %130, %131 : vector<8x32xf32>
    %c0_32 = arith.constant 0 : index
    %c0_33 = arith.constant 0 : index
    %133 = vector.load %arg8[%c0_32, %c0_33] : memref<32x32xf32, #tpu.memory_space<vmem>>, vector<32x32xf32>
    %cst_34 = arith.constant dense<0.000000e+00> : vector<8x32xf32>
    %134 = tpu.matmul %132, %133, %cst_34 {dimension_numbers = #tpu.dot_dimension_numbers<[1], [0], [0], [1], [0, 0, 1, 1], [], []>} : vector<8x32xf32>, vector<32x32xf32>, vector<8x32xf32> -> vector<8x32xf32>
    %c0_35 = arith.constant 0 : index
    %c0_36 = arith.constant 0 : index
    %135 = vector.load %arg9[%c0_35, %c0_36] : memref<1x32xf32, #tpu.memory_space<vmem>>, vector<1x32xf32>
    %136 = vector.broadcast %135 : vector<1x32xf32> to vector<8x32xf32>
    %137 = arith.addf %134, %136 : vector<8x32xf32>
    %cst_37 = arith.constant 0.000000e+00 : f32
    %138 = vector.broadcast %cst_37 : f32 to vector<8x32xf32>
    %139 = arith.maximumf %137, %138 : vector<8x32xf32>
    %c0_38 = arith.constant 0 : index
    %c0_39 = arith.constant 0 : index
    %140 = vector.load %arg10[%c0_38, %c0_39] : memref<32x128xf32, #tpu.memory_space<vmem>>, vector<32x128xf32>
    %cst_40 = arith.constant dense<0.000000e+00> : vector<8x128xf32>
    %141 = tpu.matmul %139, %140, %cst_40 {dimension_numbers = #tpu.dot_dimension_numbers<[1], [0], [0], [1], [0, 0, 1, 1], [], []>} : vector<8x32xf32>, vector<32x128xf32>, vector<8x128xf32> -> vector<8x128xf32>
    %c0_41 = arith.constant 0 : index
    %c0_42 = arith.constant 0 : index
    %142 = vector.load %arg11[%c0_41, %c0_42] : memref<1x128xf32, #tpu.memory_space<vmem>>, vector<1x128xf32>
    %143 = vector.broadcast %142 : vector<1x128xf32> to vector<8x128xf32>
    %144 = arith.addf %141, %143 : vector<8x128xf32>
    %c0_43 = arith.constant 0 : index
    %c0_44 = arith.constant 0 : index
    %145 = vector.load %arg12[%c0_43, %c0_44] : memref<8x128xf32, #tpu.memory_space<vmem>>, vector<8x128xf32>
    tpu.vector_store %arg12[%c0_43, %c0_44], %144 {strides = array<i32>} : memref<8x128xf32, #tpu.memory_space<vmem>>, vector<8x128xf32>,
    return
  }
  func.func @transform_0(%arg0: i32) -> (i32, i32, i32) {
    %c0_i32 = arith.constant 0 : i32
    %c0_i32_0 = arith.constant 0 : i32
    %c0_i32_1 = arith.constant 0 : i32
    return %c0_i32, %arg0, %c0_i32_0 : i32, i32, i32
  }
  func.func @transform_1(%arg0: i32) -> (i32, i32) {
    %c0_i32 = arith.constant 0 : i32
    %c0_i32_0 = arith.constant 0 : i32
    %c0_i32_1 = arith.constant 0 : i32
    return %c0_i32, %c0_i32_0 : i32, i32
  }
  func.func @transform_2(%arg0: i32) -> (i32, i32) {
    %c0_i32 = arith.constant 0 : i32
    %c0_i32_0 = arith.constant 0 : i32
    %c0_i32_1 = arith.constant 0 : i32
    return %c0_i32, %c0_i32_0 : i32, i32
  }
  func.func @transform_3(%arg0: i32) -> (i32, i32) {
    %c0_i32 = arith.constant 0 : i32
    %c0_i32_0 = arith.constant 0 : i32
    %c0_i32_1 = arith.constant 0 : i32
    return %c0_i32, %c0_i32_0 : i32, i32
  }
  func.func @transform_4(%arg0: i32) -> (i32, i32) {
    %c0_i32 = arith.constant 0 : i32
    %c0_i32_0 = arith.constant 0 : i32
    %c0_i32_1 = arith.constant 0 : i32
    return %c0_i32, %c0_i32_0 : i32, i32
  }
  func.func @transform_5(%arg0: i32) -> (i32, i32) {
    %c0_i32 = arith.constant 0 : i32
    %c0_i32_0 = arith.constant 0 : i32
    %c0_i32_1 = arith.constant 0 : i32
    return %c0_i32, %c0_i32_0 : i32, i32
  }
  func.func @transform_6(%arg0: i32) -> (i32, i32) {
    %c0_i32 = arith.constant 0 : i32
    %c0_i32_0 = arith.constant 0 : i32
    %c0_i32_1 = arith.constant 0 : i32
    return %c0_i32, %c0_i32_0 : i32, i32
  }
  func.func @transform_7(%arg0: i32) -> (i32, i32) {
    %c0_i32 = arith.constant 0 : i32
    %c0_i32_0 = arith.constant 0 : i32
    %c0_i32_1 = arith.constant 0 : i32
    return %c0_i32, %c0_i32_0 : i32, i32
  }
  func.func @transform_8(%arg0: i32) -> (i32, i32) {
    %c0_i32 = arith.constant 0 : i32
    %c0_i32_0 = arith.constant 0 : i32
    %c0_i32_1 = arith.constant 0 : i32
    return %c0_i32, %c0_i32_0 : i32, i32
  }
  func.func @transform_9(%arg0: i32) -> (i32, i32) {
    %c0_i32 = arith.constant 0 : i32
    %c0_i32_0 = arith.constant 0 : i32
    %c0_i32_1 = arith.constant 0 : i32
    return %c0_i32, %c0_i32_0 : i32, i32
  }
  func.func @transform_10(%arg0: i32) -> (i32, i32) {
    %c0_i32 = arith.constant 0 : i32
    %c0_i32_0 = arith.constant 0 : i32
    %c0_i32_1 = arith.constant 0 : i32
    return %c0_i32, %c0_i32_0 : i32, i32
  }
  func.func @transform_11(%arg0: i32) -> (i32, i32) {
    %c0_i32 = arith.constant 0 : i32
    %c0_i32_0 = arith.constant 0 : i32
    return %arg0, %c0_i32 : i32, i32
  }
}

</mosaic_0001>

<bundles_post_ra>
// kernel: tile.9
= control target key start
LH: loop header
LB: loop body
LE: loop exit
PB: predicated region body
PF: predicated region fallthrough
CT: control target
= control target key end

     0   :  { %s22_s0 = inlined_call_operand.vmem [shape: f32[4], index: 0, kind: input, shape index: {}]   ;;  %s23_s1 = inlined_call_operand.vmem [shape: f32[4,4], index: 1, kind: output, shape index: {}]  }
   0x1   :  { %v4_v0 = vld [vmem:[%s22_s0] ss:$0 sm:$0xff] }
   0x2   :  { %5 = vst [vmem:[%s23_s1] sm:$0xf] %v4_v0 }

// kernel: full_gru_pipeline.1
= control target key start
LH: loop header
LB: loop body
LE: loop exit
PB: predicated region body
PF: predicated region fallthrough
CT: control target
= control target key end

     0   :  { %vm74_vm0 = vcmask 523264   ;;  %v580_v26 = vmov 0.0   ;;  %s581_s16 = smov 64   ;;  %s582_s21 = smov 96   ;;  %vm206_vm5 = vcmask 261120   ;;  %s888_s1 = inlined_call_operand.vmem [shape: f32[192,64], index: 1, kind: input, shape index: {}]   ;;  %s889_s5 = inlined_call_operand.vmem [shape: f32[32,96], index: 5, kind: input, shape index: {}]   ;;  %s890_s3 = inlined_call_operand.vmem [shape: f32[64,96], index: 3, kind: input, shape index: {}]   ;;  %s891_s2 = inlined_call_operand.vmem [shape: f32[1,64], index: 2, kind: input, shape index: {}]   ;;  %s892_s0 = inlined_call_operand.vmem [shape: f32[4,8,192], index: 0, kind: input, shape index: {}]   ;;  %s893_s6 = inlined_call_operand.vmem [shape: f32[1,96], index: 6, kind: input, shape index: {}]   ;;  %s894_s4 = inlined_call_operand.vmem [shape: f32[1,96], index: 4, kind: input, shape index: {}]   ;;  %s895_s7 = inlined_call_operand.vmem [shape: f32[32,32], index: 7, kind: input, shape index: {}]   ;;  %s896_s8 = inlined_call_operand.vmem [shape: f32[1,32], index: 8, kind: input, shape index: {}]   ;;  %s897_s9 = inlined_call_operand.vmem [shape: f32[32,128], index: 9, kind: input, shape index: {}]   ;;  %s898_s10 = inlined_call_operand.vmem [shape: f32[1,128], index: 10, kind: input, shape index: {}]   ;;  %s899_s11 = inlined_call_operand.vmem [shape: f32[8,128], index: 11, kind: output, shape index: {}]  }
   0x1   :  { %v61_v0 = vld [vmem:[%s888_s1 + $0x78] sm:$0xff]  ;;  %v60_v1 = vld [vmem:[%s888_s1 + $0x70] sm:$0xff]  ;;  %v59_v2 = vld [vmem:[%s888_s1 + $0x68] sm:$0xff] }
   0x2   :  { %87 = vmatpush.msra.mxu0 %v61_v0  ;;  %v69_v3 = vld [vmem:[%s888_s1 + $0xb8] sm:$0xff]  ;;  %v58_v4 = vld [vmem:[%s888_s1 + $0x60] sm:$0xff]  ;;  %v68_v5 = vld [vmem:[%s888_s1 + $0xb0] sm:$0xff] }
   0x3   :  { %124 = vmatpush.msra.mxu1 %v69_v3  ;;  %v67_v6 = vld [vmem:[%s888_s1 + $0xa8] sm:$0xff]  ;;  %v57_v7 = vld [vmem:[%s888_s1 + $0x58] sm:$0xff]  ;;  %v66_v8 = vld [vmem:[%s888_s1 + $0xa0] sm:$0xff] }
   0x4   :  { %88 = vmatpush.msra.mxu0 %v60_v1  ;;  %v56_v9 = vld [vmem:[%s888_s1 + $0x50] sm:$0xff]  ;;  %v676_v10 = vld [vmem:[%s889_s5 + $0x18] sm:$0xff]  ;;  %v55_v13 = vld [vmem:[%s888_s1 + $0x48] sm:$0xff] }
   0x5   :  { %125 = vmatpush.msra.mxu1 %v68_v5  ;;  %v65_v11 = vld [vmem:[%s888_s1 + $0x98] sm:$0xff]  ;;  %222 = vmatpush.msra.mxu3 %v676_v10  ;;  %v685_v12 = vld [vmem:[%s889_s5 + $0x10] sm:$0xff]  ;;  %v693_v14 = vld [vmem:[%s889_s5 + $0x8] sm:$0xff] }
   0x6   :  { %89 = vmatpush.msra.mxu0 %v59_v2  ;;  %v152_v15 = vld [vmem:[%s890_s3 + $0x38] sm:$0xff]  ;;  %v64_v16 = vld [vmem:[%s888_s1 + $0x90] sm:$0xff]  ;;  %v54_v18 = vld [vmem:[%s888_s1 + $0x40] sm:$0xff] }
   0x7   :  { %126 = vmatpush.msra.mxu1 %v67_v6  ;;  %223 = vmatpush.msra.mxu3 %v685_v12  ;;  %v151_v17 = vld [vmem:[%s890_s3 + $0x30] sm:$0xff]  ;;  %v711_v19 = vld [vmem:[%s889_s5] sm:$0xff]  ;;  %v63_v20 = vld [vmem:[%s888_s1 + $0x88] sm:$0xff] }
   0x8   :  { %90 = vmatpush.msra.mxu0 %v58_v4  ;;  %177 = vmatpush.msra.mxu2 %v152_v15  ;;  %v53_v21 = vld [vmem:[%s888_s1 + $0x38] sm:$0xff]  ;;  %v150_v22 = vld [vmem:[%s890_s3 + $0x28] sm:$0xff]  ;;  %v62_v23 = vld [vmem:[%s888_s1 + $0x80] sm:$0xff] }
   0x9   :  { %127 = vmatpush.msra.mxu1 %v66_v8  ;;  %224 = vmatpush.msra.mxu3 %v693_v14  ;;  %v52_v24 = vld [vmem:[%s888_s1 + $0x30] sm:$0xff]  ;;  %v39_v25 = vld [vmem:[%s892_s0 + $0x8] sm:$0xff]  ;;  %v149_v27 = vld [vmem:[%s890_s3 + $0x20] sm:$0xff] }
   0xa   :  { %91 = vmatpush.msra.mxu0 %v57_v7  ;;  %178 = vmatpush.msra.mxu2 %v151_v17  ;;  %v51_v28 = vld [vmem:[%s888_s1 + $0x28] sm:$0xff]  ;;  %v148_v29 = vld [vmem:[%s890_s3 + $0x18] sm:$0xff]  ;;  %v50_v30 = vld [vmem:[%s888_s1 + $0x20] sm:$0xff] }
   0xb   :  { %128 = vmatpush.msra.mxu1 %v65_v11  ;;  %225 = vmatpush.msra.mxu3 %v711_v19  ;;  %v49_v31 = vld [vmem:[%s888_s1 + $0x18] sm:$0xff]  ;;  %v48_v32 = vld [vmem:[%s888_s1 + $0x10] sm:$0xff]  ;;  %v47_v33 = vld [vmem:[%s888_s1 + $0x8] sm:$0xff] }
   0xc   :  { %92 = vmatpush.msra.mxu0 %v56_v9  ;;  %226 = vmatmul.f32.vlgmr.msra.gmra.mxu3 %v580_v26  ;;  %v46_v34 = vld [vmem:[%s888_s1] sm:$0xff]  ;;  %v147_v36 = vld [vmem:[%s890_s3 + $0x10] sm:$0xff]  ;;  %v146_v37 = vld [vmem:[%s890_s3 + $0x8] sm:$0xff] }
   0xd   :  { %129 = vmatpush.msra.mxu1 %v64_v16  ;;  %179 = vmatpush.msra.mxu2 %v150_v22  ;;  %v38_v35 = vld [vmem:[%s892_s0] sm:$0xff]  ;;  %v40_v2 = vld [vmem:[%s892_s0 + $0x10] sm:$0xff]  ;;  %v41_v3 = vld [vmem:[%s892_s0 + $0x18] sm:$0xff] }
   0xe   :  { %93 = vmatpush.msra.mxu0 %v55_v13  ;;  %286 = vmatpush.msrb.mxu3 %v676_v10  ;;  %v145_v38 = vld [vmem:[%s890_s3] sm:$0xff] }
   0xf   :  { %130 = vmatpush.msra.mxu1 %v63_v20  ;;  %180 = vmatpush.msra.mxu2 %v149_v27  ;;  %v781_v39 = vld [vmem:[%s893_s6] ss:$0 sm:$0xff] }
  0x10   :  { %94 = vmatpush.msra.mxu0 %v54_v18  ;;  %287 = vmatpush.msrb.mxu3 %v685_v12  ;;  %v788_v42 = vld [vmem:[%s891_s2] ss:$0 sm:$0xff] }
  0x11   :  { %131 = vmatpush.msra.mxu1 %v62_v23  ;;  %181 = vmatpush.msra.mxu2 %v148_v29  ;;  %v795_v47 = vld [vmem:[%s894_s4] ss:$0 sm:$0xff] }
  0x12   :  { %95 = vmatpush.msra.mxu0 %v53_v21  ;;  %531 = vmatmul.msk.f32.vlgmr.msra.gmra.mxu1 %vm74_vm0, %v39_v25 }
  0x13   :  { %288 = vmatpush.msrb.mxu3 %v693_v14  ;;  %182 = vmatpush.msra.mxu2 %v147_v36 }
  0x14   :  { %96 = vmatpush.msra.mxu0 %v52_v24 }
  0x15   :  { %289 = vmatpush.msrb.mxu3 %v711_v19  ;;  %183 = vmatpush.msra.mxu2 %v146_v37  ;;  %v42_v37 = vld [vmem:[%s892_s0 + $0x20] sm:$0xff] }
  0x16   :  { %97 = vmatpush.msra.mxu0 %v51_v28 }
  0x17   :  { %350 = vmatpush.msra.mxu3 %v676_v10  ;;  %184 = vmatpush.msra.mxu2 %v145_v38  ;;  %v43_v38 = vld [vmem:[%s892_s0 + $0x28] sm:$0xff] }
  0x18   :  { %98 = vmatpush.msra.mxu0 %v50_v30 }
  0x19   :  { %351 = vmatpush.msra.mxu3 %v685_v12 }
  0x1a   :  { %99 = vmatpush.msra.mxu0 %v49_v31  ;;  %532 = vmatmul.msk.f32.gmra.mxu1 %vm74_vm0, %v41_v3 }
  0x1b   :  { %352 = vmatpush.msra.mxu3 %v693_v14 }
  0x1c   :  { %100 = vmatpush.msra.mxu0 %v48_v32 }
  0x1d   :  { %353 = vmatpush.msra.mxu3 %v711_v19 }
  0x1e   :  { %101 = vmatpush.msra.mxu0 %v47_v33 }
  0x20   :  { %102 = vmatpush.msra.mxu0 %v46_v34 }
  0x21   :  { %103 = vmatmul.f32.vlgmr.msra.gmra.mxu0 %v38_v35 }
  0x22   :  { %533 = vmatmul.msk.f32.gmra.mxu1 %vm74_vm0, %v43_v38 }
  0x29   :  { %106 = vmatmul.f32.gmra.mxu0 %v40_v2 }
  0x31   :  { %109 = vmatmul.f32.gmra.mxu0 %v42_v37 }
  0x8f   :  { %v227_v40 = vpop.f32.mrf.mxu3  ;;  %v133_v44 = vpop.f32.mrf.mxu1 }
  0x90   :  { %v228_v41 = vadd.f32 %v781_v39, %v227_v40 }
  0x92   :  { %251 = vrot.lane.b32.xlu0 %v228_v41, %s581_s16 }
  0x97   :  { %v136_v8 = vpop.f32.mrf.mxu1 }
  0x9e   :  { %v104_v43 = vpop.f32.mrf.mxu0 }
  0x9f   :  { %v105_v45 = vadd.f32 %v788_v42, %v104_v43 }
  0xa1   :  { %v134_v46 = vadd.f32 %v133_v44, %v105_v45  ;;  %v139_v45 = vpop.f32.mrf.mxu1 }
  0xa3   :  { %535 = vmatmul.msk.f32.vlgmr.msra.gmra.mxu2 %vm74_vm0, %v134_v46 }
  0xa6   :  { %v107_v7 = vpop.f32.mrf.mxu0 }
  0xa7   :  { %v108_v9 = vadd.f32 %v788_v42, %v107_v7 }
  0xa9   :  { %v137_v11 = vadd.f32 %v136_v8, %v108_v9 }
  0xab   :  { %536 = vmatmul.msk.f32.gmra.mxu2 %vm74_vm0, %v137_v11 }
  0xae   :  { %v110_v44 = vpop.f32.mrf.mxu0 }
  0xaf   :  { %v111_v46 = vadd.f32 %v788_v42, %v110_v44 }
 0x104   :  { %v252_v61 = vpop.permute.xlu0 %251 }
 0x126   :  { %v186_v48 = vpop.f32.mrf.mxu2 }
 0x127   :  { %v187_v49 = vadd.f32 %v795_v47, %v186_v48  ;;  %v140_v48 = vadd.f32 %v139_v45, %v111_v46 }
 0x129   :  { %v230_v50 = vadd.f32 %v228_v41, %v187_v49  ;;  %537 = vmatmul.msk.f32.gmra.mxu2 %vm74_vm0, %v140_v48 }
 0x12b   :  { %v539_v51 = vmul.f32 -1.442695, %v230_v50 }
 0x12d   :  { %556 = vpow2.f32 %v539_v51 }
 0x12e   :  { %v189_v23 = vpop.f32.mrf.mxu2 }
 0x12f   :  { %v190_v24 = vadd.f32 %v795_v47, %v189_v23 }
 0x133   :  { %v557_v52 = vpop.eup %556 }
 0x134   :  { %v234_v53 = vadd.f32 1.0, %v557_v52 }
 0x136   :  { %558 = vrcp.f32 %v234_v53  ;;  %v246_v57 = vand.u32 2147483648, %v234_v53  ;;  %v244_v59 = vand.u32 2147483647, %v234_v53  ;;  %vm240_vm2 = vweird.f32 %v234_v53 }
 0x138   :  { %v247_v62 = vor.u32 1.1754944e-38, %v246_v57  ;;  %vm245_vm4 = vcmp.eq.f32.partialorder %v244_v59, 8.507059e+37 }
 0x13c   :  { %v559_v54 = vpop.eup %558 }
 0x13d   :  { %v236_v55 = vmul.f32 %v559_v54, %v234_v53  ;;  %vm241_vm1 = vweird.f32 %v559_v54 }
 0x13e   :  { %vm242_vm3 = vmor %vm240_vm2, %vm241_vm1 }
 0x13f   :  { %v237_v56 = vsub.f32 1.0, %v236_v55 }
 0x141   :  { %v238_v58 = vmul.f32 %v559_v54, %v237_v56 }
 0x143   :  { %v239_v60 = vadd.f32 %v559_v54, %v238_v58 }
 0x145   :  { %v243_v63 = vsel %vm242_vm3, %v559_v54, %v239_v60 }
 0x146   :  { %v248_v0 = vsel %vm245_vm4, %v247_v62, %v243_v63 }
 0x147   :  { %v254_v1 = vmul.f32 %v252_v61, %v248_v0  ;;  %v261_v13 = vsub.f32 1.0, %v248_v0  ;;  %v267_v16 = vmul.f32 0.0, %v248_v0 }
 0x149   :  { %256 = vrot.lane.b32.xlu0 %v254_v1, %s581_s16 }
 0x1ac   :  { %v192_v57 = vpop.f32.mrf.mxu2 }
 0x1ad   :  { %v193_v58 = vadd.f32 %v795_v47, %v192_v57 }
 0x1bb   :  { %v257_v4 = vpop.permute.xlu0 %256 }
 0x1bc   :  { %v259_v5 = vadd.f32 %v257_v4, %v187_v49 }
 0x1be   :  { %560 = vtanh.f32 %v259_v5 }
 0x1c4   :  { %v561_v6 = vpop.eup %560 }
 0x1c5   :  { %263 = vrot.lane.b32.xlu1 %v561_v6, %s582_s21 }
 0x237   :  { %v264_v15 = vpop.permute.xlu1 %263 }
 0x238   :  { %v266_v17 = vmul.f32 %v264_v15, %v261_v13  ;;  %v44_v13 = vld [vmem:[%s892_s0 + $0x30] sm:$0xff]  ;;  %v45_v15 = vld [vmem:[%s892_s0 + $0x38] sm:$0xff] }
 0x239   :  { %112 = vmatmul.f32.gmra.mxu0 %v44_v13  ;;  %534 = vmatmul.msk.f32.gmra.mxu1 %vm74_vm0, %v45_v15 }
 0x23a   :  { %v268_v18 = vadd.f32 %v267_v16, %v266_v17 }
 0x23c   :  { %270 = vrot.lane.b32.xlu1 %v268_v18, %s582_s21 }
 0x2ae   :  { %v271_v20 = vpop.permute.xlu1 %270 }
 0x2af   :  { %540 = vmatmul.msk.f32.vlgmr.msrb.gmra.mxu3 %vm206_vm5, %v271_v20 }
 0x2b0   :  { %414 = vmatpush.msrb.mxu3 %v676_v10 }
 0x2b2   :  { %415 = vmatpush.msrb.mxu3 %v685_v12 }
 0x2b4   :  { %416 = vmatpush.msrb.mxu3 %v693_v14 }
 0x2b6   :  { %417 = vmatpush.msrb.mxu3 %v711_v19  ;;  %v113_v20 = vpop.f32.mrf.mxu0 }
 0x332   :  { %v291_v21 = vpop.f32.mrf.mxu3 }
 0x333   :  { %v292_v22 = vadd.f32 %v781_v39, %v291_v21  ;;  %v142_v21 = vpop.f32.mrf.mxu1 }
 0x335   :  { %315 = vrot.lane.b32.xlu2 %v292_v22, %s581_s16  ;;  %v294_v25 = vadd.f32 %v292_v22, %v190_v24  ;;  %v114_v22 = vadd.f32 %v788_v42, %v113_v20 }
 0x337   :  { %v541_v26 = vmul.f32 -1.442695, %v294_v25  ;;  %v143_v23 = vadd.f32 %v142_v21, %v114_v22 }
 0x339   :  { %562 = vpow2.f32 %v541_v26  ;;  %538 = vmatmul.msk.f32.gmra.mxu2 %vm74_vm0, %v143_v23 }
 0x33f   :  { %v563_v27 = vpop.eup %562 }
 0x340   :  { %v298_v28 = vadd.f32 1.0, %v563_v27 }
 0x342   :  { %564 = vrcp.f32 %v298_v28  ;;  %v310_v19 = vand.u32 2147483648, %v298_v28  ;;  %vm304_vm7 = vweird.f32 %v298_v28  ;;  %v308_v31 = vand.u32 2147483647, %v298_v28 }
 0x344   :  { %v311_v33 = vor.u32 1.1754944e-38, %v310_v19  ;;  %vm309_vm9 = vcmp.eq.f32.partialorder %v308_v31, 8.507059e+37 }
 0x348   :  { %v565_v10 = vpop.eup %564 }
 0x349   :  { %v300_v12 = vmul.f32 %v565_v10, %v298_v28  ;;  %vm305_vm6 = vweird.f32 %v565_v10 }
 0x34a   :  { %vm306_vm8 = vmor %vm304_vm7, %vm305_vm6 }
 0x34b   :  { %v301_v29 = vsub.f32 1.0, %v300_v12 }
 0x34d   :  { %v302_v14 = vmul.f32 %v565_v10, %v301_v29 }
 0x34f   :  { %v303_v30 = vadd.f32 %v565_v10, %v302_v14 }
 0x351   :  { %v307_v32 = vsel %vm306_vm8, %v565_v10, %v303_v30 }
 0x352   :  { %v312_v35 = vsel %vm309_vm9, %v311_v33, %v307_v32 }
 0x353   :  { %v325_v49 = vsub.f32 1.0, %v312_v35  ;;  %v331_v51 = vmul.f32 %v312_v35, %v268_v18 }
 0x38f   :  { %v316_v34 = vpop.permute.xlu2 %315 }
 0x390   :  { %v318_v36 = vmul.f32 %v316_v34, %v312_v35 }
 0x392   :  { %320 = vrot.lane.b32.xlu2 %v318_v36, %s581_s16 }
 0x3bc   :  { %v195_v14 = vpop.f32.mrf.mxu2 }
 0x3bd   :  { %v196_v42 = vadd.f32 %v795_v47, %v195_v14 }
 0x3ec   :  { %v321_v40 = vpop.permute.xlu2 %320 }
 0x3ed   :  { %v323_v41 = vadd.f32 %v321_v40, %v190_v24 }
 0x3ef   :  { %566 = vtanh.f32 %v323_v41 }
 0x3f5   :  { %v567_v43 = vpop.eup %566 }
 0x3f6   :  { %327 = vrot.lane.b32.xlu0 %v567_v43, %s582_s21 }
 0x468   :  { %v328_v50 = vpop.permute.xlu0 %327 }
 0x469   :  { %v330_v52 = vmul.f32 %v328_v50, %v325_v49  ;;  %v464_v49 = vld [vmem:[%s895_s7 + $0x18] sm:$0xff]  ;;  %v463_v50 = vld [vmem:[%s895_s7 + $0x10] sm:$0xff] }
 0x46b   :  { %v332_v53 = vadd.f32 %v331_v51, %v330_v52  ;;  %v462_v51 = vld [vmem:[%s895_s7 + $0x8] sm:$0xff]  ;;  %v461_v52 = vld [vmem:[%s895_s7] sm:$0xff] }
 0x46d   :  { %334 = vrot.lane.b32.xlu1 %v332_v53, %s582_s21 }
 0x4df   :  { %v335_v54 = vpop.permute.xlu1 %334 }
 0x4e0   :  { %542 = vmatmul.msk.f32.vlgmr.msra.gmra.mxu3 %vm206_vm5, %v335_v54 }
 0x4e1   :  { %486 = vmatpush.msra.mxu3 %v464_v49 }
 0x4e3   :  { %487 = vmatpush.msra.mxu3 %v463_v50 }
 0x4e5   :  { %488 = vmatpush.msra.mxu3 %v462_v51 }
 0x4e7   :  { %489 = vmatpush.msra.mxu3 %v461_v52 }
 0x563   :  { %v355_v55 = vpop.f32.mrf.mxu3 }
 0x564   :  { %v356_v56 = vadd.f32 %v781_v39, %v355_v55 }
 0x566   :  { %379 = vrot.lane.b32.xlu2 %v356_v56, %s581_s16  ;;  %v358_v59 = vadd.f32 %v356_v56, %v193_v58 }
 0x568   :  { %v543_v60 = vmul.f32 -1.442695, %v358_v59  ;;  %v497_v59 = vld [vmem:[%s897_s9 + $0x10] sm:$0xff] }
 0x56a   :  { %568 = vpow2.f32 %v543_v60  ;;  %v496_v60 = vld [vmem:[%s897_s9 + $0x8] sm:$0xff] }
 0x570   :  { %v569_v61 = vpop.eup %568 }
 0x571   :  { %v362_v62 = vadd.f32 1.0, %v569_v61  ;;  %v495_v61 = vld [vmem:[%s897_s9] sm:$0xff] }
 0x573   :  { %570 = vrcp.f32 %v362_v62  ;;  %v374_v4 = vand.u32 2147483648, %v362_v62  ;;  %vm368_vm11 = vweird.f32 %v362_v62  ;;  %v372_v5 = vand.u32 2147483647, %v362_v62 }
 0x575   :  { %v375_v7 = vor.u32 1.1754944e-38, %v374_v4  ;;  %vm373_vm13 = vcmp.eq.f32.partialorder %v372_v5, 8.507059e+37 }
 0x579   :  { %v571_v63 = vpop.eup %570 }
 0x57a   :  { %v364_v0 = vmul.f32 %v571_v63, %v362_v62  ;;  %vm369_vm10 = vweird.f32 %v571_v63 }
 0x57b   :  { %vm370_vm12 = vmor %vm368_vm11, %vm369_vm10 }
 0x57c   :  { %v365_v1 = vsub.f32 1.0, %v364_v0 }
 0x57e   :  { %v366_v2 = vmul.f32 %v571_v63, %v365_v1 }
 0x580   :  { %v367_v3 = vadd.f32 %v571_v63, %v366_v2 }
 0x582   :  { %v371_v6 = vsel %vm370_vm12, %v571_v63, %v367_v3  ;;  %v554_v63 = vld [vmem:[%s896_s8] ss:$0 sm:$0xff] }
 0x583   :  { %v376_v9 = vsel %vm373_vm13, %v375_v7, %v371_v6  ;;  %v555_v3 = vld [vmem:[%s898_s10] ss:$0 sm:$0xff] }
 0x584   :  { %v389_v24 = vsub.f32 1.0, %v376_v9  ;;  %v395_v26 = vmul.f32 %v376_v9, %v332_v53 }
 0x5c0   :  { %v380_v8 = vpop.permute.xlu2 %379 }
 0x5c1   :  { %v382_v11 = vmul.f32 %v380_v8, %v376_v9 }
 0x5c3   :  { %384 = vrot.lane.b32.xlu0 %v382_v11, %s581_s16 }
 0x635   :  { %v385_v16 = vpop.permute.xlu0 %384 }
 0x636   :  { %v387_v17 = vadd.f32 %v385_v16, %v193_v58  ;;  %v498_v58 = vld [vmem:[%s897_s9 + $0x18] sm:$0xff] }
 0x637   :  { %518 = vmatpush.msrb.mxu1 %v498_v58 }
 0x638   :  { %572 = vtanh.f32 %v387_v17 }
 0x639   :  { %519 = vmatpush.msrb.mxu1 %v497_v59 }
 0x63b   :  { %520 = vmatpush.msrb.mxu1 %v496_v60 }
 0x63d   :  { %521 = vmatpush.msrb.mxu1 %v495_v61 }
 0x63e   :  { %v573_v18 = vpop.eup %572 }
 0x63f   :  { %391 = vrot.lane.b32.xlu1 %v573_v18, %s582_s21 }
 0x6b1   :  { %v392_v25 = vpop.permute.xlu1 %391 }
 0x6b2   :  { %v394_v27 = vmul.f32 %v392_v25, %v389_v24 }
 0x6b4   :  { %v396_v28 = vadd.f32 %v395_v26, %v394_v27 }
 0x6b6   :  { %398 = vrot.lane.b32.xlu2 %v396_v28, %s582_s21 }
 0x710   :  { %v399_v10 = vpop.permute.xlu2 %398 }
 0x711   :  { %544 = vmatmul.msk.f32.vlgmr.msrb.gmra.mxu3 %vm206_vm5, %v399_v10 }
 0x794   :  { %v419_v12 = vpop.f32.mrf.mxu3 }
 0x795   :  { %v420_v29 = vadd.f32 %v781_v39, %v419_v12 }
 0x797   :  { %443 = vrot.lane.b32.xlu0 %v420_v29, %s581_s16  ;;  %v422_v30 = vadd.f32 %v420_v29, %v196_v42 }
 0x799   :  { %v545_v19 = vmul.f32 -1.442695, %v422_v30 }
 0x79b   :  { %574 = vpow2.f32 %v545_v19 }
 0x7a1   :  { %v575_v31 = vpop.eup %574 }
 0x7a2   :  { %v426_v32 = vadd.f32 1.0, %v575_v31 }
 0x7a4   :  { %576 = vrcp.f32 %v426_v32  ;;  %v438_v38 = vand.u32 2147483648, %v426_v32  ;;  %vm432_vm15 = vweird.f32 %v426_v32  ;;  %v436_v39 = vand.u32 2147483647, %v426_v32 }
 0x7a6   :  { %v439_v41 = vor.u32 1.1754944e-38, %v438_v38  ;;  %vm437_vm1 = vcmp.eq.f32.partialorder %v436_v39, 8.507059e+37 }
 0x7aa   :  { %v577_v33 = vpop.eup %576 }
 0x7ab   :  { %v428_v34 = vmul.f32 %v577_v33, %v426_v32  ;;  %vm433_vm14 = vweird.f32 %v577_v33 }
 0x7ac   :  { %vm434_vm0 = vmor %vm432_vm15, %vm433_vm14 }
 0x7ad   :  { %v429_v35 = vsub.f32 1.0, %v428_v34 }
 0x7af   :  { %v430_v36 = vmul.f32 %v577_v33, %v429_v35 }
 0x7b1   :  { %v431_v37 = vadd.f32 %v577_v33, %v430_v36 }
 0x7b3   :  { %v435_v40 = vsel %vm434_vm0, %v577_v33, %v431_v37 }
 0x7b4   :  { %v440_v43 = vsel %vm437_vm1, %v439_v41, %v435_v40 }
 0x7b5   :  { %v453_v53 = vsub.f32 1.0, %v440_v43  ;;  %v459_v55 = vmul.f32 %v440_v43, %v396_v28 }
 0x809   :  { %v444_v47 = vpop.permute.xlu0 %443 }
 0x80a   :  { %v446_v44 = vmul.f32 %v444_v47, %v440_v43 }
 0x80c   :  { %448 = vrot.lane.b32.xlu1 %v446_v44, %s581_s16 }
 0x87e   :  { %v449_v45 = vpop.permute.xlu1 %448 }
 0x87f   :  { %v451_v46 = vadd.f32 %v449_v45, %v196_v42 }
 0x881   :  { %578 = vtanh.f32 %v451_v46 }
 0x887   :  { %v579_v48 = vpop.eup %578 }
 0x888   :  { %455 = vrot.lane.b32.xlu2 %v579_v48, %s582_s21 }
 0x8e2   :  { %v456_v54 = vpop.permute.xlu2 %455 }
 0x8e3   :  { %v458_v56 = vmul.f32 %v456_v54, %v453_v53 }
 0x8e5   :  { %v460_v57 = vadd.f32 %v459_v55, %v458_v56 }
 0x8e7   :  { %470 = vrot.lane.b32.xlu0 %v460_v57, %s582_s21 }
 0x959   :  { %v471_v62 = vpop.permute.xlu0 %470 }
 0x95a   :  { %546 = vmatmul.msk.f32.vlgmr.msra.gmra.mxu3 %vm206_vm5, %v471_v62 }
 0x9dd   :  { %v491_v0 = vpop.f32.mrf.mxu3 }
 0x9de   :  { %v492_v1 = vadd.f32 %v554_v63, %v491_v0 }
 0x9e0   :  { %v494_v2 = vmax.f32 %v492_v1, 0.0 }
 0x9e2   :  { %547 = vmatmul.msk.f32.vlgmr.msrb.gmra.mxu1 %vm206_vm5, %v494_v2 }
 0xa5f   :  { %v523_v4 = vpop.f32.mrf.mxu1 }
 0xa60   :  { %v524_v5 = vadd.f32 %v555_v3, %v523_v4 }
 0xa62   :  { %526 = vst [vmem:[%s899_s11] sm:$0xff] %v524_v5 }

</bundles_post_ra>
